<compile_context>
chip_gen: v5e
topology: v5e:2x2
jax: 0.10.0
libtpu: 0.0.40
codegen_flags: <defaults>
</compile_context>

<pallas_src>
import functools

import numpy as np

import jax
import jax.numpy as jnp
from jax.experimental import pallas as pl
from jax.experimental.pallas import tpu as pltpu


def _round_up(x, m):
    return ((x + m - 1) // m) * m


@functools.lru_cache(maxsize=None)
def _generation_tuning():
    """Per-TPU-generation (max batch tile, scoped-VMEM limit in bytes)."""
    vmem_phys = None
    try:
        info = pltpu.get_tpu_info()
        vmem_phys = getattr(info, "vmem_capacity_bytes", None)
    except Exception:
        vmem_phys = None
    if vmem_phys is None:
        vmem_phys = 64 * 1024 * 1024  # conservative fallback
    if vmem_phys <= 64 * 1024 * 1024:
        # v7x-class: 64 MiB VMEM per TensorCore -> smaller tile + limit.
        return 4096, 48 * 1024 * 1024
    # v5e / v6e: 128 MiB physical VMEM.
    return 8192, 96 * 1024 * 1024


def _vae_kernel(x_ref, eps_ref,
                w1_ref, wmulv_ref, w3_ref, w4_ref, bias_ref,
                recon_ref, stats_ref):
    f32 = jnp.float32
    hp = jax.lax.Precision.HIGHEST
    H = w1_ref.shape[1]          # hidden_dim
    E2 = wmulv_ref.shape[1]      # 2 * encoding_dim
    E = E2 // 2                  # encoding_dim
    D = w4_ref.shape[1]          # input_dim
    cdt = w1_ref.dtype           # MXU operand dtype (bf16 by default)

    # packed biases: row 0 = b1, row 1 = [bmu | blv], row 2 = b3, row 3 = b4
    b1 = bias_ref[0:1, :H]
    bmulv = bias_ref[1:2, :E2]
    b3 = bias_ref[2:3, :H]
    b4 = bias_ref[3:4, :D]

    # Tile-local cast of x (avoids a wrapper-side HBM pass over x).
    x = x_ref[...].astype(cdt)                                       # (TB, D)

    # encode: h1 = relu(x @ W1 + b1)   (MXU, f32 accumulate)
    h1 = jnp.dot(x, w1_ref[...], preferred_element_type=f32,
                 precision=hp) + b1
    h1 = jnp.maximum(h1, 0.0)                                        # (TB, H) f32

    # fused mu/logvar projection, kept fully in f32 (tiny; exp amplifies error)
    stats = jnp.dot(h1, wmulv_ref[...], preferred_element_type=f32,
                    precision=hp) + bmulv                            # (TB, 2E) f32
    mu = stats[:, :E]
    logvar = stats[:, E:]

    # reparameterize (f32): z = mu + eps * exp(0.5 * logvar)
    std = jnp.exp(0.5 * logvar)
    z = mu + eps_ref[...] * std                                      # (TB, E) f32

    # decode: recon = relu(z @ W3 + b3) @ W4 + b4
    h3 = jnp.dot(z.astype(cdt), w3_ref[...], preferred_element_type=f32,
                 precision=hp) + b3
    h3 = jnp.maximum(h3, 0.0)                                        # (TB, H) f32
    recon = jnp.dot(h3.astype(cdt), w4_ref[...], preferred_element_type=f32,
                    precision=hp) + b4                               # (TB, D) f32

    recon_ref[...] = recon.astype(recon_ref.dtype)
    stats_ref[...] = stats.astype(stats_ref.dtype)


@functools.partial(jax.jit,
                   static_argnames=("block_b", "compute_dtype", "out_dtype"))
def vae_forward(x, eps, params, *, block_b=None,
                compute_dtype=jnp.bfloat16, out_dtype=jnp.float32):
    """Fused VAE forward (Pallas TPU).

    Args:
      x:      (B, input_dim) float32 coordinates
      eps:    (B, encoding_dim) float32 standard-normal noise
      params: dict w1,b1,wmu,bmu,wlv,blv,w3,b3,w4,b4; weights stored (in, out),
              biases stored (1, out)
      block_b: batch tile size (None -> per-generation default, 4096/8192)
      compute_dtype: dtype of the W1/W3/W4 MXU operands (bf16 default;
              accumulation and the mu/logvar projection stay f32)
      out_dtype: dtype of recon in HBM (f32 default; bf16 halves writeback)

    Returns:
      (recon, mu, logvar); mu/logvar in float32, recon in out_dtype.
    """
    B, D = x.shape
    H = params["w1"].shape[1]
    E = params["wmu"].shape[1]

    max_tb, vmem_limit = _generation_tuning()
    if block_b is None:
        block_b = max_tb

    # ---- weights: W1/W3/W4 in compute dtype; mu/logvar projection in f32 ----
    w1 = params["w1"].astype(compute_dtype)                          # (D, H)
    wmulv = jnp.concatenate([params["wmu"], params["wlv"]],
                            axis=1).astype(jnp.float32)              # (H, 2E)
    w3 = params["w3"].astype(compute_dtype)                          # (E, H)
    w4 = params["w4"].astype(compute_dtype)                          # (H, D)

    # ---- pack all biases into one (4, BW) f32 slab (one resident buffer) ----
    bw = max(H, 2 * E, D)

    def _pad_row(b):
        return jnp.pad(b, ((0, 0), (0, bw - b.shape[1])))

    bias = jnp.concatenate(
        [_pad_row(params["b1"]),
         _pad_row(jnp.concatenate([params["bmu"], params["blv"]], axis=1)),
         _pad_row(params["b3"]),
         _pad_row(params["b4"])],
        axis=0).astype(jnp.float32)                                  # (4, BW)

    # ---- batch tile (multiple of 16 for bf16 sublane packing); no jnp.pad:
    #      the boundary block is masked by Pallas.
    align = 16
    tb = max(align, min(_round_up(block_b, align), _round_up(B, align)))
    grid = (pl.cdiv(B, tb),)

    batch_block = lambda i: (i, 0)
    resident = lambda i: (0, 0)

    # ---- advisory cost estimate for the XLA scheduler ----
    cd_size = np.dtype(compute_dtype).itemsize
    out_size = np.dtype(out_dtype).itemsize
    flops = int(2 * B * (D * H + H * 2 * E + E * H + H * D))
    transcendentals = int(B * E)
    bytes_accessed = int(
        B * (D + E) * 4                        # x, eps reads (f32)
        + B * (D * out_size + 2 * E * 4)       # recon, stats writes
        + (D * H + E * H + H * D) * cd_size    # w1, w3, w4
        + H * 2 * E * 4                        # fused mu/logvar weights (f32)
        + 4 * bw * 4)                          # packed biases
    cost = pl.CostEstimate(flops=flops, transcendentals=transcendentals,
                           bytes_accessed=bytes_accessed)

    recon, stats = pl.pallas_call(
        _vae_kernel,
        out_shape=(
            jax.ShapeDtypeStruct((B, D), out_dtype),                 # recon
            jax.ShapeDtypeStruct((B, 2 * E), jnp.float32),           # [mu | logvar]
        ),
        grid=grid,
        in_specs=[
            pl.BlockSpec((tb, D), batch_block),       # x (f32, cast in-kernel)
            pl.BlockSpec((tb, E), batch_block),       # eps
            pl.BlockSpec((D, H), resident),           # w1
            pl.BlockSpec((H, 2 * E), resident),       # [wmu | wlv] (f32)
            pl.BlockSpec((E, H), resident),           # w3
            pl.BlockSpec((H, D), resident),           # w4
            pl.BlockSpec((4, bw), resident),          # packed biases
        ],
        out_specs=(
            pl.BlockSpec((tb, D), batch_block),       # recon
            pl.BlockSpec((tb, 2 * E), batch_block),   # stats
        ),
        compiler_params=pltpu.CompilerParams(
            dimension_semantics=("parallel",),
            vmem_limit_bytes=vmem_limit,
        ),
        cost_estimate=cost,
    )(x.astype(jnp.float32), eps.astype(jnp.float32),
      w1, wmulv, w3, w4, bias)

    mu = stats[:, :E]
    logvar = stats[:, E:]
    return recon, mu, logvar


def init_vae_params(key, input_dim, encoding_dim=1, hidden_dim=None):
    """Deterministic init mimicking nn.Linear default (uniform +-1/sqrt(fan_in))."""
    if hidden_dim is None:
        hidden_dim = max(input_dim // 2, 8)

    def linear(key, fan_in, fan_out):
        kw, kb = jax.random.split(key)
        bound = 1.0 / jnp.sqrt(fan_in)
        w = jax.random.uniform(kw, (fan_in, fan_out), jnp.float32, -bound, bound)
        b = jax.random.uniform(kb, (1, fan_out), jnp.float32, -bound, bound)
        return w, b

    k1, k2, k3, k4, k5 = jax.random.split(key, 5)
    w1, b1 = linear(k1, input_dim, hidden_dim)
    wmu, bmu = linear(k2, hidden_dim, encoding_dim)
    wlv, blv = linear(k3, hidden_dim, encoding_dim)
    w3, b3 = linear(k4, encoding_dim, hidden_dim)
    w4, b4 = linear(k5, hidden_dim, input_dim)
    return dict(w1=w1, b1=b1, wmu=wmu, bmu=bmu, wlv=wlv, blv=blv,
                w3=w3, b3=b3, w4=w4, b4=b4)


def vae_forward_ref(x, eps, params):
    """Pure-JAX float32 reference (HIGHEST-precision dots) for correctness."""
    hp = jax.lax.Precision.HIGHEST
    h1 = jnp.maximum(jnp.dot(x, params["w1"], precision=hp) + params["b1"], 0.0)
    mu = jnp.dot(h1, params["wmu"], precision=hp) + params["bmu"]
    logvar = jnp.dot(h1, params["wlv"], precision=hp) + params["blv"]
    z = mu + eps * jnp.exp(0.5 * logvar)
    h3 = jnp.maximum(jnp.dot(z, params["w3"], precision=hp) + params["b3"], 0.0)
    recon = jnp.dot(h3, params["w4"], precision=hp) + params["b4"]
    return recon, mu, logvar


if __name__ == "__main__":
    key = jax.random.PRNGKey(0)
    k_param, k_x, k_eps = jax.random.split(key, 3)

    batch = 64                 # small demo batch
    input_dim = 32             # flattened atomic coordinates
    encoding_dim = 4
    hidden_dim = max(input_dim // 2, 8)   # = 16, module default

    params = init_vae_params(k_param, input_dim, encoding_dim, hidden_dim)
    x = jax.random.normal(k_x, (batch, input_dim), jnp.float32)
    eps = jax.random.normal(k_eps, (batch, encoding_dim), jnp.float32)

    recon_r, mu_r, logvar_r = vae_forward_ref(x, eps, params)

    # 1) f32 MXU operands, small tile so the grid has 2 steps: tight check.
    recon, mu, logvar = vae_forward(x, eps, params, block_b=32,
                                    compute_dtype=jnp.float32)
    jax.block_until_ready((recon, mu, logvar))
    assert recon.shape == (batch, input_dim)
    assert mu.shape == (batch, encoding_dim)
    assert logvar.shape == (batch, encoding_dim)
    assert jnp.allclose(recon, recon_r, atol=1e-4, rtol=1e-4)
    assert jnp.allclose(mu, mu_r, atol=1e-4, rtol=1e-4)
    assert jnp.allclose(logvar, logvar_r, atol=1e-4, rtol=1e-4)

    # 2) default bf16-operand path with generation-tuned tile: loose check.
    recon_b, mu_b, logvar_b = vae_forward(x, eps, params)
    jax.block_until_ready((recon_b, mu_b, logvar_b))
    assert jnp.allclose(recon_b, recon_r, atol=3e-2, rtol=3e-2)
    assert jnp.allclose(mu_b, mu_r, atol=3e-2, rtol=3e-2)
    assert jnp.allclose(logvar_b, logvar_r, atol=3e-2, rtol=3e-2)

    # 3) ragged batch (B not a multiple of the tile): exercises the no-pad
    #    masked boundary block.
    b2 = 50
    x2 = x[:b2]
    eps2 = eps[:b2]
    recon2_r, mu2_r, logvar2_r = vae_forward_ref(x2, eps2, params)
    recon2, mu2, logvar2 = vae_forward(x2, eps2, params,
                                       compute_dtype=jnp.float32)
    jax.block_until_ready((recon2, mu2, logvar2))
    assert recon2.shape == (b2, input_dim)
    assert jnp.allclose(recon2, recon2_r, atol=1e-4, rtol=1e-4)
    assert jnp.allclose(mu2, mu2_r, atol=1e-4, rtol=1e-4)
    assert jnp.allclose(logvar2, logvar2_r, atol=1e-4, rtol=1e-4)

    print("KERNEL_OK")
</pallas_src>

<mosaic_0001>
module attributes {stable_mosaic.version = 11 : i64} {
  func.func @_vae_kernel(%arg0: i32, %arg1: memref<32x32xf32, #tpu.memory_space<vmem>>, %arg2: memref<32x4xf32, #tpu.memory_space<vmem>>, %arg3: memref<32x16xf32, #tpu.memory_space<vmem>>, %arg4: memref<16x8xf32, #tpu.memory_space<vmem>>, %arg5: memref<4x16xf32, #tpu.memory_space<vmem>>, %arg6: memref<16x32xf32, #tpu.memory_space<vmem>>, %arg7: memref<4x32xf32, #tpu.memory_space<vmem>>, %arg8: memref<32x32xf32, #tpu.memory_space<vmem>>, %arg9: memref<32x8xf32, #tpu.memory_space<vmem>>) attributes {dimension_semantics = [#tpu.dimension_semantics<parallel>], iteration_bounds = array<i64: 2>, scalar_prefetch = 0 : i64, scratch_operands = 0 : i64, tpu.core_type = #tpu.core_type<tc>, window_params = [{transform_indices = @transform_0, window_bounds = array<i64: 32, 32>}, {transform_indices = @transform_1, window_bounds = array<i64: 32, 4>}, {pipeline_mode = #tpu.pipeline_mode<synchronous>, transform_indices = @transform_2, window_bounds = array<i64: 32, 16>}, {pipeline_mode = #tpu.pipeline_mode<synchronous>, transform_indices = @transform_3, window_bounds = array<i64: 16, 8>}, {pipeline_mode = #tpu.pipeline_mode<synchronous>, transform_indices = @transform_4, window_bounds = array<i64: 4, 16>}, {pipeline_mode = #tpu.pipeline_mode<synchronous>, transform_indices = @transform_5, window_bounds = array<i64: 16, 32>}, {pipeline_mode = #tpu.pipeline_mode<synchronous>, transform_indices = @transform_6, window_bounds = array<i64: 4, 32>}, {transform_indices = @transform_7, window_bounds = array<i64: 32, 32>}, {transform_indices = @transform_8, window_bounds = array<i64: 32, 8>}]} {
    %c0 = arith.constant 0 : index
    %c0_0 = arith.constant 0 : index
    %0 = vector.load %arg7[%c0, %c0_0] : memref<4x32xf32, #tpu.memory_space<vmem>>, vector<1x16xf32>
    %c1 = arith.constant 1 : index
    %c0_1 = arith.constant 0 : index
    %1 = vector.load %arg7[%c1, %c0_1] : memref<4x32xf32, #tpu.memory_space<vmem>>, vector<1x8xf32>
    %c2 = arith.constant 2 : index
    %c0_2 = arith.constant 0 : index
    %2 = vector.load %arg7[%c2, %c0_2] : memref<4x32xf32, #tpu.memory_space<vmem>>, vector<1x16xf32>
    %c3 = arith.constant 3 : index
    %c0_3 = arith.constant 0 : index
    %3 = vector.load %arg7[%c3, %c0_3] : memref<4x32xf32, #tpu.memory_space<vmem>>, vector<1x32xf32>
    %c0_4 = arith.constant 0 : index
    %c0_5 = arith.constant 0 : index
    %4 = vector.load %arg1[%c0_4, %c0_5] : memref<32x32xf32, #tpu.memory_space<vmem>>, vector<32x32xf32>
    %c0_6 = arith.constant 0 : index
    %c0_7 = arith.constant 0 : index
    %5 = vector.load %arg3[%c0_6, %c0_7] : memref<32x16xf32, #tpu.memory_space<vmem>>, vector<32x16xf32>
    %cst = arith.constant dense<0.000000e+00> : vector<32x16xf32>
    %6 = tpu.matmul %4, %5, %cst {dimension_numbers = #tpu.dot_dimension_numbers<[1], [0], [0], [1], [0, 0, 1, 1], [], []>, precision = #tpu.contract_precision<fp32>} : vector<32x32xf32>, vector<32x16xf32>, vector<32x16xf32> -> vector<32x16xf32>
    %7 = vector.broadcast %0 : vector<1x16xf32> to vector<32x16xf32>
    %8 = arith.addf %6, %7 : vector<32x16xf32>
    %cst_8 = arith.constant 0.000000e+00 : f32
    %9 = vector.broadcast %cst_8 : f32 to vector<32x16xf32>
    %10 = arith.maximumf %8, %9 : vector<32x16xf32>
    %c0_9 = arith.constant 0 : index
    %c0_10 = arith.constant 0 : index
    %11 = vector.load %arg4[%c0_9, %c0_10] : memref<16x8xf32, #tpu.memory_space<vmem>>, vector<16x8xf32>
    %cst_11 = arith.constant dense<0.000000e+00> : vector<32x8xf32>
    %12 = tpu.matmul %10, %11, %cst_11 {dimension_numbers = #tpu.dot_dimension_numbers<[1], [0], [0], [1], [0, 0, 1, 1], [], []>, precision = #tpu.contract_precision<fp32>} : vector<32x16xf32>, vector<16x8xf32>, vector<32x8xf32> -> vector<32x8xf32>
    %13 = vector.broadcast %1 : vector<1x8xf32> to vector<32x8xf32>
    %14 = arith.addf %12, %13 : vector<32x8xf32>
    %15 = vector.extract_strided_slice %14 {offsets = [0, 0], sizes = [32, 4], strides = [1, 1]} : vector<32x8xf32> to vector<32x4xf32>
    %16 = vector.extract_strided_slice %14 {offsets = [0, 4], sizes = [32, 4], strides = [1, 1]} : vector<32x8xf32> to vector<32x4xf32>
    %cst_12 = arith.constant 5.000000e-01 : f32
    %17 = vector.broadcast %cst_12 : f32 to vector<32x4xf32>
    %18 = arith.mulf %17, %16 : vector<32x4xf32>
    %19 = math.exp %18 : vector<32x4xf32>
    %c0_13 = arith.constant 0 : index
    %c0_14 = arith.constant 0 : index
    %20 = vector.load %arg2[%c0_13, %c0_14] : memref<32x4xf32, #tpu.memory_space<vmem>>, vector<32x4xf32>
    %21 = arith.mulf %20, %19 : vector<32x4xf32>
    %22 = arith.addf %15, %21 : vector<32x4xf32>
    %c0_15 = arith.constant 0 : index
    %c0_16 = arith.constant 0 : index
    %23 = vector.load %arg5[%c0_15, %c0_16] : memref<4x16xf32, #tpu.memory_space<vmem>>, vector<4x16xf32>
    %cst_17 = arith.constant dense<0.000000e+00> : vector<32x16xf32>
    %24 = tpu.matmul %22, %23, %cst_17 {dimension_numbers = #tpu.dot_dimension_numbers<[1], [0], [0], [1], [0, 0, 1, 1], [], []>, precision = #tpu.contract_precision<fp32>} : vector<32x4xf32>, vector<4x16xf32>, vector<32x16xf32> -> vector<32x16xf32>
    %25 = vector.broadcast %2 : vector<1x16xf32> to vector<32x16xf32>
    %26 = arith.addf %24, %25 : vector<32x16xf32>
    %cst_18 = arith.constant 0.000000e+00 : f32
    %27 = vector.broadcast %cst_18 : f32 to vector<32x16xf32>
    %28 = arith.maximumf %26, %27 : vector<32x16xf32>
    %c0_19 = arith.constant 0 : index
    %c0_20 = arith.constant 0 : index
    %29 = vector.load %arg6[%c0_19, %c0_20] : memref<16x32xf32, #tpu.memory_space<vmem>>, vector<16x32xf32>
    %cst_21 = arith.constant dense<0.000000e+00> : vector<32x32xf32>
    %30 = tpu.matmul %28, %29, %cst_21 {dimension_numbers = #tpu.dot_dimension_numbers<[1], [0], [0], [1], [0, 0, 1, 1], [], []>, precision = #tpu.contract_precision<fp32>} : vector<32x16xf32>, vector<16x32xf32>, vector<32x32xf32> -> vector<32x32xf32>
    %31 = vector.broadcast %3 : vector<1x32xf32> to vector<32x32xf32>
    %32 = arith.addf %30, %31 : vector<32x32xf32>
    %c0_22 = arith.constant 0 : index
    %c0_23 = arith.constant 0 : index
    %33 = vector.load %arg8[%c0_22, %c0_23] : memref<32x32xf32, #tpu.memory_space<vmem>>, vector<32x32xf32>
    tpu.vector_store %arg8[%c0_22, %c0_23], %32 {strides = array<i32>} : memref<32x32xf32, #tpu.memory_space<vmem>>, vector<32x32xf32>,
    %c0_24 = arith.constant 0 : index
    %c0_25 = arith.constant 0 : index
    %34 = vector.load %arg9[%c0_24, %c0_25] : memref<32x8xf32, #tpu.memory_space<vmem>>, vector<32x8xf32>
    tpu.vector_store %arg9[%c0_24, %c0_25], %14 {strides = array<i32>} : memref<32x8xf32, #tpu.memory_space<vmem>>, vector<32x8xf32>,
    return
  }
  func.func @transform_0(%arg0: i32) -> (i32, i32) {
    %c0_i32 = arith.constant 0 : i32
    %c0_i32_0 = arith.constant 0 : i32
    return %arg0, %c0_i32 : i32, i32
  }
  func.func @transform_1(%arg0: i32) -> (i32, i32) {
    %c0_i32 = arith.constant 0 : i32
    %c0_i32_0 = arith.constant 0 : i32
    return %arg0, %c0_i32 : i32, i32
  }
  func.func @transform_2(%arg0: i32) -> (i32, i32) {
    %c0_i32 = arith.constant 0 : i32
    %c0_i32_0 = arith.constant 0 : i32
    %c0_i32_1 = arith.constant 0 : i32
    return %c0_i32, %c0_i32_0 : i32, i32
  }
  func.func @transform_3(%arg0: i32) -> (i32, i32) {
    %c0_i32 = arith.constant 0 : i32
    %c0_i32_0 = arith.constant 0 : i32
    %c0_i32_1 = arith.constant 0 : i32
    return %c0_i32, %c0_i32_0 : i32, i32
  }
  func.func @transform_4(%arg0: i32) -> (i32, i32) {
    %c0_i32 = arith.constant 0 : i32
    %c0_i32_0 = arith.constant 0 : i32
    %c0_i32_1 = arith.constant 0 : i32
    return %c0_i32, %c0_i32_0 : i32, i32
  }
  func.func @transform_5(%arg0: i32) -> (i32, i32) {
    %c0_i32 = arith.constant 0 : i32
    %c0_i32_0 = arith.constant 0 : i32
    %c0_i32_1 = arith.constant 0 : i32
    return %c0_i32, %c0_i32_0 : i32, i32
  }
  func.func @transform_6(%arg0: i32) -> (i32, i32) {
    %c0_i32 = arith.constant 0 : i32
    %c0_i32_0 = arith.constant 0 : i32
    %c0_i32_1 = arith.constant 0 : i32
    return %c0_i32, %c0_i32_0 : i32, i32
  }
  func.func @transform_7(%arg0: i32) -> (i32, i32) {
    %c0_i32 = arith.constant 0 : i32
    %c0_i32_0 = arith.constant 0 : i32
    return %arg0, %c0_i32 : i32, i32
  }
  func.func @transform_8(%arg0: i32) -> (i32, i32) {
    %c0_i32 = arith.constant 0 : i32
    %c0_i32_0 = arith.constant 0 : i32
    return %arg0, %c0_i32 : i32, i32
  }
}

</mosaic_0001>

<bundles_post_ra>
// kernel: vae_forward.1
= control target key start
LH: loop header
LB: loop body
LE: loop exit
PB: predicated region body
PF: predicated region fallthrough
CT: control target
= control target key end

     0   :  { %s1691_s27 = smov 0   ;;  %s1845_s0 = inlined_call_operand.vmem [shape: f32[64,32], index: 0, kind: input, shape index: {}]   ;;  %s1846_s1 = inlined_call_operand.vmem [shape: f32[64,4], index: 1, kind: input, shape index: {}]   ;;  %s1847_s2 = inlined_call_operand.vmem [shape: f32[32,16], index: 2, kind: input, shape index: {}]   ;;  %s1848_s3 = inlined_call_operand.vmem [shape: f32[16,8], index: 3, kind: input, shape index: {}]   ;;  %s1849_s4 = inlined_call_operand.vmem [shape: f32[4,16], index: 4, kind: input, shape index: {}]   ;;  %s1850_s5 = inlined_call_operand.vmem [shape: f32[16,32], index: 5, kind: input, shape index: {}]   ;;  %s1851_s6 = inlined_call_operand.vmem [shape: f32[4,32], index: 6, kind: input, shape index: {}]   ;;  %s1852_s7 = inlined_call_operand.vmem [shape: f32[64,32], index: 7, kind: output, shape index: {0}]   ;;  %s1853_s8 = inlined_call_operand.vmem [shape: f32[64,8], index: 8, kind: output, shape index: {1}]  }
   0x1 LB: > { %s1601_s28 = sadd.s32 4294967295, %s1643_s27   ;;  %p1605_p0 = scmp.ge.s32.totalorder %s1643_s27, 1  ;;  %s1643_s27 = sphi %s1691_s27, %s19_s27  }
   0x2   : > { %p277_p1 = scmp.lt.s32.totalorder %s1643_s27, 3 }
   0x4   : > { %p278_p2 = pnand %p1605_p0, %p277_p1 }
   0x5   : > { %s1606_s13 = sshll.u32 (!%p278_p2), %s1601_s28, 2  ;;  %s1645_s12 = smov (!%p278_p2), 124  }
   0x6   : > { %281 = sbr.rel (%p278_p2) target bundleno = 879 (0x36f), region = 48  ;;  %p322_p3 = scmp.lt.s32.totalorder (!%p278_p2), %s1606_s13, 7 }
   0xb   : > { %v356_v0 = vld [vmem:[%s1847_s2 + $0x18] sm:$0xff]  ;;  %v355_v1 = vld [vmem:[%s1847_s2 + $0x10] sm:$0xff]  ;;  %v354_v2 = vld [vmem:[%s1847_s2 + $0x8] sm:$0xff]  ;;  %s1855_s13 = smov (!%p322_p3, %s1606_s13), 7  ;;  %vm358_vm0 = vcmask 261120   ;;  %vm656_vm1 = vcmask 130048  }
   0xc   : > { %v1708_v3 = vand.u32 4294901760, %v356_v0  ;;  %v1710_v4 = vand.u32 4294901760, %v355_v1  ;;  %v1712_v5 = vand.u32 4294901760, %v354_v2  ;;  %v353_v6 = vld [vmem:[%s1847_s2] sm:$0xff]  ;;  %s1726_s16 = sshll.u32 %s1855_s13, 3  ;;  %v654_v52 = vld [vmem:[%s1848_s3 + $0x8] sm:$0xff] }
   0xd   : > { %v1717_v7 = vand.u32 4294901760, %v353_v6  ;;  %s1733_s19 = scalar_lea.vmem %s1845_s0, %s1726_s16  ;;  %v683_v53 = vand.u32 4294901760, %v654_v52  ;;  %v653_v58 = vld [vmem:[%s1848_s3] sm:$0xff]  ;;  %s1771_s9 = scalar_lea.vmem %s1853_s8, %s1726_s16  ;;  %vm1494_vm2 = vcmask 64512   ;;  %vm976_vm3 = vcmask 1043456  }
   0xe   : > { %v437_v8 = vsub.f32 %v356_v0, %v1708_v3  ;;  %384 = vmatpush.msra.mxu0 %v1708_v3  ;;  %v443_v9 = vsub.f32 %v355_v1, %v1710_v4  ;;  %535 = vmatpush.msra.mxu3 %v1708_v3  ;;  %v449_v10 = vsub.f32 %v354_v2, %v1712_v5  ;;  %v349_v18 = vld [vmem:[%s1733_s19] sm:$0xff]  ;;  %v350_v20 = vld [vmem:[%s1733_s19 + $0x8] sm:$0xff]  ;;  %v351_v27 = vld [vmem:[%s1733_s19 + $0x10] sm:$0xff]  ;;  %v685_v60 = vand.u32 4294901760, %v653_v58  ;;  %s1800_s15 = scalar_lea.vmem %s1846_s1, %s1726_s16  ;;  %s1832_s28 = scalar_lea.vmem %s1852_s7, %s1726_s16 }
   0xf   : > { %v455_v11 = vsub.f32 %v353_v6, %v1717_v7  ;;  %v360_v21 = vsel %vm358_vm0, %v349_v18, 0  ;;  %v363_v22 = vsel %vm358_vm0, %v350_v20, 0  ;;  %v366_v32 = vsel %vm358_vm0, %v351_v27, 0  ;;  %v352_v39 = vld [vmem:[%s1733_s19 + $0x18] sm:$0xff] }
  0x10   : > { %491 = vmatpush.msra.mxu2 %v437_v8  ;;  %386 = vmatpush.msra.mxu0 %v1710_v4  ;;  %v438_v12 = vand.u32 4294901760, %v437_v8  ;;  %v444_v13 = vand.u32 4294901760, %v443_v9  ;;  %v450_v14 = vand.u32 4294901760, %v449_v10  ;;  %v391_v25 = vand.u32 4294901760, %v360_v21 }
  0x11   : > { %537 = vmatpush.msra.mxu3 %v1710_v4  ;;  %v456_v15 = vand.u32 4294901760, %v455_v11  ;;  %v399_v28 = vand.u32 4294901760, %v363_v22  ;;  %v407_v37 = vand.u32 4294901760, %v366_v32  ;;  %v369_v42 = vsel %vm358_vm0, %v352_v39, 0 }
  0x12   : > { %494 = vmatpush.msra.mxu2 %v443_v9  ;;  %v439_v16 = vsub.f32 %v437_v8, %v438_v12  ;;  %388 = vmatpush.msra.mxu0 %v1712_v5  ;;  %v445_v17 = vsub.f32 %v443_v9, %v444_v13  ;;  %v451_v19 = vsub.f32 %v449_v10, %v450_v14  ;;  %v415_v45 = vand.u32 4294901760, %v369_v42 }
  0x13   : > { %539 = vmatpush.msra.mxu3 %v1712_v5  ;;  %v457_v26 = vsub.f32 %v455_v11, %v456_v15  ;;  %v392_v29 = vsub.f32 %v360_v21, %v391_v25  ;;  %v400_v31 = vsub.f32 %v363_v22, %v399_v28  ;;  %v408_v41 = vsub.f32 %v366_v32, %v407_v37 }
  0x14   : > { %v440_v23 = vand.u32 4294901760, %v439_v16  ;;  %497 = vmatpush.msra.mxu2 %v449_v10  ;;  %v446_v24 = vand.u32 4294901760, %v445_v17  ;;  %390 = vmatpush.msra.mxu0 %v1717_v7  ;;  %v452_v30 = vand.u32 4294901760, %v451_v19  ;;  %v416_v47 = vsub.f32 %v369_v42, %v415_v45 }
  0x15   : > { %541 = vmatpush.msra.mxu3 %v1717_v7  ;;  %v393_v33 = vand.u32 4294901760, %v392_v29  ;;  %v458_v34 = vand.u32 4294901760, %v457_v26  ;;  %v401_v36 = vand.u32 4294901760, %v400_v31  ;;  %v409_v44 = vand.u32 4294901760, %v408_v41 }
  0x16   : > { %582 = vmatpush.msrb.mxu0 %v438_v12  ;;  %441 = vmatpush.msra.mxu1 %v440_v23  ;;  %v417_v49 = vand.u32 4294901760, %v416_v47  ;;  %v735_v54 = vsub.f32 %v654_v52, %v683_v53  ;;  %v741_v62 = vsub.f32 %v653_v58, %v685_v60  ;;  %vm963_vm4 = vcmask 31744  }
  0x17   : > { %500 = vmatpush.msra.mxu2 %v455_v11  ;;  %v394_v35 = vsub.f32 %v392_v29, %v393_v33  ;;  %545 = vmatmul.f32.vlgmr.msra.gmra.mxu3 %v393_v33  ;;  %v402_v40 = vsub.f32 %v400_v31, %v401_v36  ;;  %v410_v46 = vsub.f32 %v408_v41, %v409_v44 }
  0x18   : > { %586 = vmatpush.msrb.mxu0 %v444_v13  ;;  %447 = vmatpush.msra.mxu1 %v446_v24  ;;  %v418_v50 = vsub.f32 %v416_v47, %v417_v49  ;;  %v736_v55 = vand.u32 4294901760, %v735_v54  ;;  %v742_v63 = vand.u32 4294901760, %v741_v62 }
  0x19   : > { %503 = vmatmul.f32.vlgmr.msra.gmra.mxu2 %v392_v29  ;;  %v395_v38 = vand.u32 4294901760, %v394_v35  ;;  %v403_v43 = vand.u32 4294901760, %v402_v40  ;;  %v411_v48 = vand.u32 4294901760, %v410_v46 }
  0x1a   : > { %590 = vmatpush.msrb.mxu0 %v450_v14  ;;  %453 = vmatpush.msra.mxu1 %v452_v30  ;;  %v419_v51 = vand.u32 4294901760, %v418_v50  ;;  %v737_v56 = vsub.f32 %v735_v54, %v736_v55  ;;  %v743_v0 = vsub.f32 %v741_v62, %v742_v63 }
  0x1b   : > { %396 = vmatmul.f32.vlgmr.msra.gmra.mxu0 %v395_v38  ;;  %684 = vmatpush.msrb.mxu2 %v683_v53 }
  0x1c   : > { %594 = vmatpush.msrb.mxu0 %v456_v15  ;;  %459 = vmatpush.msra.mxu1 %v458_v34  ;;  %v738_v57 = vand.u32 4294901760, %v737_v56  ;;  %v744_v2 = vand.u32 4294901760, %v743_v0 }
  0x1d   : > { %461 = vmatmul.f32.vlgmr.msra.gmra.mxu1 %v391_v25  ;;  %686 = vmatpush.msrb.mxu2 %v685_v60 }
  0x1e   : > { %625 = vmatpush.msrb.mxu1 %v1708_v3  ;;  %779 = vmatpush.msra.mxu0 %v735_v54 }
  0x1f   : > { %551 = vmatmul.f32.gmra.mxu3 %v401_v36  ;;  %864 = vmatpush.msra.mxu2 %v736_v55 }
  0x20   : > { %627 = vmatpush.msrb.mxu1 %v1710_v4  ;;  %739 = vmatpush.msrb.mxu3 %v738_v57  ;;  %v1625_v4 = vld [vmem:[%s1851_s6] ss:$0 sm:$0xff] }
  0x21   : > { %508 = vmatmul.f32.gmra.mxu2 %v400_v31  ;;  %782 = vmatpush.msra.mxu0 %v741_v62 }
  0x22   : > { %629 = vmatpush.msrb.mxu1 %v1712_v5  ;;  %868 = vmatpush.msra.mxu2 %v742_v63 }
  0x23   : > { %404 = vmatmul.f32.gmra.mxu0 %v403_v43  ;;  %745 = vmatpush.msrb.mxu3 %v744_v2 }
  0x24   : > { %631 = vmatpush.msrb.mxu1 %v1717_v7 }
  0x25   : > { %465 = vmatmul.f32.gmra.mxu1 %v399_v28  ;;  %901 = vmatpush.msra.mxu3 %v683_v53 }
  0x26   : > { %819 = vmatpush.msra.mxu1 %v683_v53 }
  0x27   : > { %557 = vmatmul.f32.gmra.mxu3 %v409_v44 }
  0x28   : > { %821 = vmatpush.msra.mxu1 %v685_v60  ;;  %903 = vmatpush.msra.mxu3 %v685_v60 }
  0x29   : > { %513 = vmatmul.f32.gmra.mxu2 %v408_v41 }
  0x2b   : > { %412 = vmatmul.f32.gmra.mxu0 %v411_v48 }
  0x2d   : > { %469 = vmatmul.f32.gmra.mxu1 %v407_v37 }
  0x2f   : > { %563 = vmatmul.f32.gmra.mxu3 %v417_v49 }
  0x31   : > { %518 = vmatmul.f32.gmra.mxu2 %v416_v47 }
  0x33   : > { %420 = vmatmul.f32.gmra.mxu0 %v419_v51 }
  0x35   : > { %473 = vmatmul.f32.gmra.mxu1 %v415_v45 }
  0x3b   : > { %596 = vmatmul.f32.vlgmr.msrb.gmra.mxu0 %v391_v25 }
  0x3d   : > { %633 = vmatmul.f32.vlgmr.msrb.gmra.mxu1 %v391_v25 }
  0x43   : > { %600 = vmatmul.f32.gmra.mxu0 %v399_v28 }
  0x45   : > { %637 = vmatmul.f32.gmra.mxu1 %v399_v28 }
  0x4b   : > { %604 = vmatmul.f32.gmra.mxu0 %v407_v37 }
  0x4d   : > { %641 = vmatmul.f32.gmra.mxu1 %v407_v37 }
  0x53   : > { %608 = vmatmul.f32.gmra.mxu0 %v415_v45 }
  0x55   : > { %645 = vmatmul.f32.gmra.mxu1 %v415_v45 }
  0x98   : > { %v397_v61 = vpop.f32.mrf.mxu0 }
  0x99   : > { %v398_v8 = vadd.f32 %v1625_v4, %v397_v61 }
  0x9a   : > { %v462_v59 = vpop.f32.mrf.mxu1  ;;  %v546_v9 = vpop.f32.mrf.mxu3 }
  0x9b   : > { %v463_v10 = vadd.f32 %v462_v59, %v398_v8 }
  0x9c   : > { %v504_v7 = vpop.f32.mrf.mxu2 }
  0x9d   : > { %v505_v13 = vadd.f32 %v504_v7, %v463_v10 }
  0x9f   : > { %v547_v16 = vadd.f32 %v546_v9, %v505_v13 }
  0xa0   : > { %v405_v3 = vpop.f32.mrf.mxu0 }
  0xa1   : > { %v406_v14 = vadd.f32 %v1625_v4, %v405_v3 }
  0xa2   : > { %v466_v1 = vpop.f32.mrf.mxu1  ;;  %v552_v19 = vpop.f32.mrf.mxu3 }
  0xa3   : > { %v467_v17 = vadd.f32 %v466_v1, %v406_v14 }
  0xa4   : > { %v509_v15 = vpop.f32.mrf.mxu2 }
  0xa5   : > { %v510_v22 = vadd.f32 %v509_v15, %v467_v17 }
  0xa7   : > { %v553_v27 = vadd.f32 %v552_v19, %v510_v22 }
  0xa8   : > { %v413_v6 = vpop.f32.mrf.mxu0 }
  0xa9   : > { %v414_v23 = vadd.f32 %v1625_v4, %v413_v6 }
  0xaa   : > { %v470_v5 = vpop.f32.mrf.mxu1  ;;  %v558_v34 = vpop.f32.mrf.mxu3 }
  0xab   : > { %v471_v28 = vadd.f32 %v470_v5, %v414_v23 }
  0xac   : > { %v514_v26 = vpop.f32.mrf.mxu2 }
  0xad   : > { %v515_v36 = vadd.f32 %v514_v26, %v471_v28 }
  0xaf   : > { %v559_v42 = vadd.f32 %v558_v34, %v515_v36 }
  0xb0   : > { %v421_v12 = vpop.f32.mrf.mxu0 }
  0xb1   : > { %v422_v37 = vadd.f32 %v1625_v4, %v421_v12 }
  0xb2   : > { %v474_v11 = vpop.f32.mrf.mxu1  ;;  %v564_v54 = vpop.f32.mrf.mxu3 }
  0xb3   : > { %v475_v43 = vadd.f32 %v474_v11, %v422_v37 }
  0xb4   : > { %v519_v46 = vpop.f32.mrf.mxu2 }
  0xb5   : > { %v520_v52 = vadd.f32 %v519_v46, %v475_v43 }
  0xb7   : > { %v565_v58 = vadd.f32 %v564_v54, %v520_v52 }
  0xb8   : > { %v597_v20 = vpop.f32.mrf.mxu0 }
  0xb9   : > { %v598_v21 = vadd.f32 %v597_v20, %v547_v16 }
  0xba   : > { %v634_v18 = vpop.f32.mrf.mxu1 }
  0xbb   : > { %v635_v24 = vadd.f32 %v634_v18, %v598_v21  ;;  %v1626_v18 = vld [vmem:[%s1851_s6 + $0x1] ss:$0 sm:$0xff] }
  0xbd   : > { %v649_v25 = vmax.f32 %v635_v24, 0.0 }
  0xbf   : > { %v658_v29 = vsel %vm656_vm1, %v649_v25, 0 }
  0xc0   : > { %v687_v31 = vand.u32 4294901760, %v658_v29  ;;  %v601_v32 = vpop.f32.mrf.mxu0 }
  0xc1   : > { %v602_v33 = vadd.f32 %v601_v32, %v553_v27 }
  0xc2   : > { %v638_v30 = vpop.f32.mrf.mxu1  ;;  %v688_v35 = vsub.f32 %v658_v29, %v687_v31  ;;  %747 = vmatmul.f32.vlgmr.msrb.gmra.mxu3 %v687_v31 }
  0xc3   : > { %v639_v38 = vadd.f32 %v638_v30, %v602_v33 }
  0xc4   : > { %785 = vmatmul.f32.vlgmr.msra.gmra.mxu0 %v688_v35  ;;  %v689_v39 = vand.u32 4294901760, %v688_v35 }
  0xc5   : > { %v650_v40 = vmax.f32 %v639_v38, 0.0 }
  0xc6   : > { %825 = vmatmul.f32.vlgmr.msra.gmra.mxu1 %v689_v39  ;;  %v690_v41 = vsub.f32 %v688_v35, %v689_v39 }
  0xc7   : > { %v661_v44 = vsel %vm656_vm1, %v650_v40, 0 }
  0xc8   : > { %v695_v47 = vand.u32 4294901760, %v661_v44  ;;  %v605_v48 = vpop.f32.mrf.mxu0  ;;  %v691_v49 = vand.u32 4294901760, %v690_v41 }
  0xc9   : > { %v606_v50 = vadd.f32 %v605_v48, %v559_v42 }
  0xca   : > { %v642_v45 = vpop.f32.mrf.mxu1  ;;  %692 = vmatmul.f32.vlgmr.msrb.gmra.mxu2 %v691_v49  ;;  %751 = vmatmul.f32.gmra.mxu3 %v695_v47  ;;  %v696_v51 = vsub.f32 %v661_v44, %v695_v47 }
  0xcb   : > { %v643_v53 = vadd.f32 %v642_v45, %v606_v50  ;;  %v961_v45 = vld [vmem:[%s1849_s4] sm:$0xf] }
  0xcc   : > { %790 = vmatmul.f32.gmra.mxu0 %v696_v51  ;;  %v697_v55 = vand.u32 4294901760, %v696_v51 }
  0xcd   : > { %v651_v56 = vmax.f32 %v643_v53, 0.0 }
  0xce   : > { %831 = vmatmul.f32.gmra.mxu1 %v697_v55  ;;  %v698_v57 = vsub.f32 %v696_v51, %v697_v55 }
  0xcf   : > { %v664_v59 = vsel %vm656_vm1, %v651_v56, 0 }
  0xd0   : > { %v703_v60 = vand.u32 4294901760, %v664_v59  ;;  %v609_v61 = vpop.f32.mrf.mxu0  ;;  %v699_v63 = vand.u32 4294901760, %v698_v57 }
  0xd1   : > { %v610_v0 = vadd.f32 %v609_v61, %v565_v58 }
  0xd2   : > { %v646_v62 = vpop.f32.mrf.mxu1  ;;  %700 = vmatmul.f32.gmra.mxu2 %v699_v63  ;;  %755 = vmatmul.f32.gmra.mxu3 %v703_v60  ;;  %v704_v1 = vsub.f32 %v664_v59, %v703_v60 }
  0xd3   : > { %v647_v2 = vadd.f32 %v646_v62, %v610_v0 }
  0xd4   : > { %795 = vmatmul.f32.gmra.mxu0 %v704_v1  ;;  %v705_v3 = vand.u32 4294901760, %v704_v1 }
  0xd5   : > { %v652_v4 = vmax.f32 %v647_v2, 0.0 }
  0xd6   : > { %837 = vmatmul.f32.gmra.mxu1 %v705_v3  ;;  %v706_v5 = vsub.f32 %v704_v1, %v705_v3 }
  0xd7   : > { %v667_v6 = vsel %vm656_vm1, %v652_v4, 0 }
  0xd8   : > { %v711_v7 = vand.u32 4294901760, %v667_v6  ;;  %v707_v8 = vand.u32 4294901760, %v706_v5 }
  0xda   : > { %708 = vmatmul.f32.gmra.mxu2 %v707_v8  ;;  %759 = vmatmul.f32.gmra.mxu3 %v711_v7  ;;  %v712_v9 = vsub.f32 %v667_v6, %v711_v7 }
  0xdc   : > { %800 = vmatmul.f32.gmra.mxu0 %v712_v9  ;;  %v713_v10 = vand.u32 4294901760, %v712_v9 }
  0xde   : > { %843 = vmatmul.f32.gmra.mxu1 %v713_v10  ;;  %v714_v11 = vsub.f32 %v712_v9, %v713_v10 }
  0xe0   : > { %v715_v12 = vand.u32 4294901760, %v714_v11 }
  0xe2   : > { %716 = vmatmul.f32.gmra.mxu2 %v715_v12  ;;  %905 = vmatmul.f32.vlgmr.msra.gmra.mxu3 %v687_v31 }
  0xea   : > { %870 = vmatmul.f32.vlgmr.msra.gmra.mxu2 %v687_v31  ;;  %909 = vmatmul.f32.gmra.mxu3 %v695_v47 }
  0xf2   : > { %874 = vmatmul.f32.gmra.mxu2 %v695_v47  ;;  %913 = vmatmul.f32.gmra.mxu3 %v703_v60  ;;  %v978_v47 = vsel %vm976_vm3, %v961_v45, 0 }
  0xf3   : > { %v995_v48 = vand.u32 4294901760, %v978_v47 }
  0xf5   : > { %996 = vmatpush.msrb.mxu0 %v995_v48  ;;  %v1046_v53 = vsub.f32 %v978_v47, %v995_v48  ;;  %1123 = vmatpush.msrb.mxu3 %v995_v48 }
  0xf7   : > { %v1047_v55 = vand.u32 4294901760, %v1046_v53  ;;  %1085 = vmatpush.msrb.mxu2 %v1046_v53 }
  0xf9   : > { %v1048_v62 = vsub.f32 %v1046_v53, %v1047_v55  ;;  %1167 = vmatpush.msra.mxu0 %v1047_v55 }
  0xfa   : > { %878 = vmatmul.f32.gmra.mxu2 %v703_v60  ;;  %917 = vmatmul.f32.gmra.mxu3 %v711_v7 }
  0xfb   : > { %v1049_v1 = vand.u32 4294901760, %v1048_v62 }
  0xfd   : > { %1050 = vmatpush.msrb.mxu1 %v1049_v1 }
  0xff   : > { %1201 = vmatpush.msra.mxu1 %v995_v48 }
 0x102   : > { %882 = vmatmul.f32.gmra.mxu2 %v711_v7 }
 0x141   : > { %v786_v22 = vpop.f32.mrf.mxu0 }
 0x143   : > { %v826_v24 = vpop.f32.mrf.mxu1 }
 0x145   : > { %v748_v13 = vpop.f32.mrf.mxu3 }
 0x149   : > { %v791_v29 = vpop.f32.mrf.mxu0 }
 0x14b   : > { %v832_v34 = vpop.f32.mrf.mxu1 }
 0x14d   : > { %v693_v14 = vpop.f32.mrf.mxu2  ;;  %v752_v15 = vpop.f32.mrf.mxu3 }
 0x14e   : > { %v694_v21 = vadd.f32 %v1626_v18, %v693_v14 }
 0x150   : > { %v749_v23 = vadd.f32 %v748_v13, %v694_v21 }
 0x151   : > { %v796_v43 = vpop.f32.mrf.mxu0 }
 0x152   : > { %v787_v27 = vadd.f32 %v786_v22, %v749_v23  ;;  %v934_v23 = vld [vmem:[%s1800_s15 + $0x8] sm:$0xff] }
 0x153   : > { %v838_v52 = vpop.f32.mrf.mxu1 }
 0x154   : > { %v827_v31 = vadd.f32 %v826_v24, %v787_v27 }
 0x155   : > { %v701_v16 = vpop.f32.mrf.mxu2  ;;  %v756_v17 = vpop.f32.mrf.mxu3 }
 0x156   : > { %v702_v26 = vadd.f32 %v1626_v18, %v701_v16 }
 0x158   : > { %v753_v30 = vadd.f32 %v752_v15, %v702_v26 }
 0x159   : > { %v801_v0 = vpop.f32.mrf.mxu0 }
 0x15a   : > { %v792_v37 = vadd.f32 %v791_v29, %v753_v30 }
 0x15b   : > { %v844_v5 = vpop.f32.mrf.mxu1 }
 0x15c   : > { %v833_v41 = vadd.f32 %v832_v34, %v792_v37 }
 0x15d   : > { %v709_v19 = vpop.f32.mrf.mxu2  ;;  %v760_v20 = vpop.f32.mrf.mxu3 }
 0x15e   : > { %v710_v35 = vadd.f32 %v1626_v18, %v709_v19 }
 0x160   : > { %v757_v40 = vadd.f32 %v756_v17, %v710_v35  ;;  %v933_v17 = vld [vmem:[%s1800_s15] sm:$0xff] }
 0x162   : > { %v797_v51 = vadd.f32 %v796_v43, %v757_v40 }
 0x164   : > { %v839_v59 = vadd.f32 %v838_v52, %v797_v51 }
 0x165   : > { %v717_v25 = vpop.f32.mrf.mxu2  ;;  %v906_v28 = vpop.f32.mrf.mxu3 }
 0x166   : > { %v718_v49 = vadd.f32 %v1626_v18, %v717_v25 }
 0x168   : > { %v761_v57 = vadd.f32 %v760_v20, %v718_v49 }
 0x16a   : > { %v802_v3 = vadd.f32 %v801_v0, %v761_v57  ;;  %v1224_v57 = vld [vmem:[%s1850_s5 + $0x8] sm:$0xff] }
 0x16c   : > { %v845_v7 = vadd.f32 %v844_v5, %v802_v3 }
 0x16d   : > { %v871_v32 = vpop.f32.mrf.mxu2  ;;  %v910_v39 = vpop.f32.mrf.mxu3 }
 0x16e   : > { %v872_v33 = vadd.f32 %v871_v32, %v827_v31  ;;  %v935_v32 = vld [vmem:[%s1800_s15 + $0x10] sm:$0xff] }
 0x170   : > { %v1773_v36 = vadd.f32 %v906_v28, %v872_v33 }
 0x172   : > { %v921_v38 = vmul.f32 0.5, %v1773_v36  ;;  %1495 = vst.msk [vmem:[%s1771_s9] sm:$0xff] %vm1494_vm2, %v1773_v36 }
 0x174   : > { %v925_v42 = vmul.f32 1.442695, %v921_v38 }
 0x175   : > { %v875_v44 = vpop.f32.mrf.mxu2  ;;  %v914_v60 = vpop.f32.mrf.mxu3 }
 0x176   : > { %v876_v46 = vadd.f32 %v875_v44, %v833_v41  ;;  %1629 = vpow2.f32 %v925_v42  ;;  %v936_v42 = vld [vmem:[%s1800_s15 + $0x18] sm:$0xff] }
 0x178   : > { %v1782_v50 = vadd.f32 %v910_v39, %v876_v46 }
 0x17a   : > { %v922_v54 = vmul.f32 0.5, %v1782_v50  ;;  %1496 = vst.msk [vmem:[%s1771_s9 + $0x8] sm:$0xff] %vm1494_vm2, %v1782_v50 }
 0x17c   : > { %v1630_v56 = vpop.eup %1629  ;;  %v927_v58 = vmul.f32 1.442695, %v922_v54 }
 0x17d   : > { %v879_v61 = vpop.f32.mrf.mxu2  ;;  %941 = vrot.lane.b32.xlu0 %v1630_v56, %s1645_s12  ;;  %v918_v11 = vpop.f32.mrf.mxu3 }
 0x17e   : > { %1631 = vpow2.f32 %v927_v58  ;;  %v880_v63 = vadd.f32 %v879_v61, %v839_v59  ;;  %v1252_v59 = vand.u32 4294901760, %v1224_v57 }
 0x180   : > { %v915_v2 = vadd.f32 %v914_v60, %v880_v63  ;;  %1253 = vmatpush.msra.mxu2 %v1252_v59  ;;  %v1304_v60 = vsub.f32 %v1224_v57, %v1252_v59  ;;  %v1223_v63 = vld [vmem:[%s1850_s5] sm:$0xff] }
 0x181   : > { %v1254_v3 = vand.u32 4294901760, %v1223_v63 }
 0x182   : > { %v923_v4 = vmul.f32 0.5, %v915_v2  ;;  %1497 = vst.msk [vmem:[%s1771_s9 + $0x10] sm:$0xff] %vm1494_vm2, %v915_v2  ;;  %v1305_v61 = vand.u32 4294901760, %v1304_v60 }
 0x183   : > { %1255 = vmatpush.msra.mxu2 %v1254_v3 }
 0x184   : > { %v1632_v6 = vpop.eup %1631  ;;  %v929_v8 = vmul.f32 1.442695, %v923_v4  ;;  %v1306_v62 = vsub.f32 %v1304_v60, %v1305_v61  ;;  %v1310_v4 = vsub.f32 %v1223_v63, %v1254_v3 }
 0x185   : > { %v883_v9 = vpop.f32.mrf.mxu2  ;;  %943 = vrot.lane.b32.xlu0 %v1632_v6, %s1645_s12 }
 0x186   : > { %v884_v10 = vadd.f32 %v883_v9, %v845_v7  ;;  %1633 = vpow2.f32 %v929_v8  ;;  %v1311_v5 = vand.u32 4294901760, %v1310_v4 }
 0x188   : > { %v919_v12 = vadd.f32 %v918_v11, %v884_v10  ;;  %v1312_v6 = vsub.f32 %v1310_v4, %v1311_v5  ;;  %v1627_v10 = vld [vmem:[%s1851_s6 + $0x2] ss:$0 sm:$0xff] }
 0x18a   : > { %v924_v13 = vmul.f32 0.5, %v919_v12  ;;  %1498 = vst.msk [vmem:[%s1771_s9 + $0x18] sm:$0xff] %vm1494_vm2, %v919_v12  ;;  %v1313_v9 = vand.u32 4294901760, %v1312_v6 }
 0x18c   : > { %v1634_v14 = vpop.eup %1633  ;;  %v931_v15 = vmul.f32 1.442695, %v924_v13 }
 0x18d   : > { %945 = vrot.lane.b32.xlu1 %v1634_v14, %s1645_s12 }
 0x18e   : > { %1635 = vpow2.f32 %v931_v15 }
 0x194   : > { %v1636_v16 = vpop.eup %1635 }
 0x195   : > { %947 = vrot.lane.b32.xlu1 %v1636_v16, %s1645_s12 }
 0x1ef   : > { %v942_v18 = vpop.permute.xlu0 %941 }
 0x1f0   : > { %v953_v19 = vmul.f32 %v942_v18, %v933_v17 }
 0x1f2   : > { %v957_v20 = vadd.f32 %v953_v19, %v1773_v36 }
 0x1f4   : > { %v965_v21 = vsel %vm963_vm4, %v957_v20, 0 }
 0x1f5   : > { %v997_v22 = vand.u32 4294901760, %v965_v21 }
 0x1f7   : > { %v998_v24 = vsub.f32 %v965_v21, %v997_v22  ;;  %1052 = vmatmul.f32.vlgmr.msrb.gmra.mxu1 %v997_v22  ;;  %v944_v25 = vpop.permute.xlu0 %943 }
 0x1f8   : > { %v954_v26 = vmul.f32 %v944_v25, %v934_v23  ;;  %1388 = vmatpush.msrb.mxu1 %v1252_v59 }
 0x1f9   : > { %1088 = vmatmul.f32.vlgmr.msrb.gmra.mxu2 %v998_v24  ;;  %v999_v27 = vand.u32 4294901760, %v998_v24 }
 0x1fa   : > { %v958_v28 = vadd.f32 %v954_v26, %v1782_v50  ;;  %1390 = vmatpush.msrb.mxu1 %v1254_v3  ;;  %1433 = vmatpush.msrb.mxu2 %v1305_v61 }
 0x1fb   : > { %1127 = vmatmul.f32.vlgmr.msrb.gmra.mxu3 %v999_v27  ;;  %v1000_v29 = vsub.f32 %v998_v24, %v999_v27 }
 0x1fc   : > { %v968_v30 = vsel %vm963_vm4, %v958_v28, 0  ;;  %1437 = vmatpush.msrb.mxu2 %v1311_v5 }
 0x1fd   : > { %v1005_v31 = vand.u32 4294901760, %v968_v30  ;;  %v1001_v33 = vand.u32 4294901760, %v1000_v29 }
 0x1ff   : > { %v946_v34 = vpop.permute.xlu1 %945  ;;  %1002 = vmatmul.f32.vlgmr.msrb.gmra.mxu0 %v1001_v33  ;;  %1056 = vmatmul.f32.gmra.mxu1 %v1005_v31  ;;  %v1006_v35 = vsub.f32 %v968_v30, %v1005_v31 }
 0x200   : > { %v955_v36 = vmul.f32 %v946_v34, %v935_v32  ;;  %1348 = vmatpush.msrb.mxu0 %v1304_v60 }
 0x201   : > { %1093 = vmatmul.f32.gmra.mxu2 %v1006_v35  ;;  %v1007_v37 = vand.u32 4294901760, %v1006_v35 }
 0x202   : > { %v959_v38 = vadd.f32 %v955_v36, %v915_v2  ;;  %v1307_v2 = vand.u32 4294901760, %v1306_v62  ;;  %1351 = vmatpush.msrb.mxu0 %v1310_v4 }
 0x203   : > { %1133 = vmatmul.f32.gmra.mxu3 %v1007_v37  ;;  %v1008_v39 = vsub.f32 %v1006_v35, %v1007_v37 }
 0x204   : > { %v971_v40 = vsel %vm963_vm4, %v959_v38, 0  ;;  %1308 = vmatpush.msra.mxu3 %v1307_v2 }
 0x205   : > { %v1013_v41 = vand.u32 4294901760, %v971_v40  ;;  %v1009_v43 = vand.u32 4294901760, %v1008_v39 }
 0x206   : > { %1314 = vmatpush.msra.mxu3 %v1313_v9 }
 0x207   : > { %v948_v44 = vpop.permute.xlu1 %947  ;;  %1010 = vmatmul.f32.gmra.mxu0 %v1009_v43  ;;  %1060 = vmatmul.f32.gmra.mxu1 %v1013_v41  ;;  %v1014_v45 = vsub.f32 %v971_v40, %v1013_v41 }
 0x208   : > { %v956_v46 = vmul.f32 %v948_v44, %v936_v42  ;;  %1470 = vmatpush.msrb.mxu3 %v1252_v59 }
 0x209   : > { %1098 = vmatmul.f32.gmra.mxu2 %v1014_v45  ;;  %v1015_v47 = vand.u32 4294901760, %v1014_v45 }
 0x20a   : > { %v960_v48 = vadd.f32 %v956_v46, %v919_v12  ;;  %1472 = vmatpush.msrb.mxu3 %v1254_v3 }
 0x20b   : > { %1139 = vmatmul.f32.gmra.mxu3 %v1015_v47  ;;  %v1016_v49 = vsub.f32 %v1014_v45, %v1015_v47 }
 0x20c   : > { %v974_v50 = vsel %vm963_vm4, %v960_v48, 0 }
 0x20d   : > { %v1021_v51 = vand.u32 4294901760, %v974_v50  ;;  %v1017_v52 = vand.u32 4294901760, %v1016_v49 }
 0x20f   : > { %1018 = vmatmul.f32.gmra.mxu0 %v1017_v52  ;;  %1064 = vmatmul.f32.gmra.mxu1 %v1021_v51  ;;  %v1022_v53 = vsub.f32 %v974_v50, %v1021_v51 }
 0x211   : > { %1103 = vmatmul.f32.gmra.mxu2 %v1022_v53  ;;  %v1023_v54 = vand.u32 4294901760, %v1022_v53 }
 0x213   : > { %1145 = vmatmul.f32.gmra.mxu3 %v1023_v54  ;;  %v1024_v55 = vsub.f32 %v1022_v53, %v1023_v54 }
 0x215   : > { %v1025_v56 = vand.u32 4294901760, %v1024_v55 }
 0x217   : > { %1026 = vmatmul.f32.gmra.mxu0 %v1025_v56  ;;  %1203 = vmatmul.f32.vlgmr.msra.gmra.mxu1 %v997_v22 }
 0x21f   : > { %1169 = vmatmul.f32.vlgmr.msra.gmra.mxu0 %v997_v22  ;;  %1207 = vmatmul.f32.gmra.mxu1 %v1005_v31 }
 0x227   : > { %1173 = vmatmul.f32.gmra.mxu0 %v1005_v31  ;;  %1211 = vmatmul.f32.gmra.mxu1 %v1013_v41 }
 0x22f   : > { %1177 = vmatmul.f32.gmra.mxu0 %v1013_v41  ;;  %1215 = vmatmul.f32.gmra.mxu1 %v1021_v51 }
 0x237   : > { %1181 = vmatmul.f32.gmra.mxu0 %v1021_v51 }
 0x274   : > { %v1053_v58 = vpop.f32.mrf.mxu1 }
 0x27c   : > { %v1003_v0 = vpop.f32.mrf.mxu0  ;;  %v1057_v1 = vpop.f32.mrf.mxu1 }
 0x27d   : > { %v1004_v13 = vadd.f32 %v1627_v10, %v1003_v0  ;;  %v1089_v14 = vpop.f32.mrf.mxu2 }
 0x27e   : > { %v1128_v16 = vpop.f32.mrf.mxu3 }
 0x27f   : > { %v1054_v15 = vadd.f32 %v1053_v58, %v1004_v13 }
 0x281   : > { %v1090_v18 = vadd.f32 %v1089_v14, %v1054_v15 }
 0x283   : > { %v1129_v22 = vadd.f32 %v1128_v16, %v1090_v18 }
 0x284   : > { %v1011_v7 = vpop.f32.mrf.mxu0  ;;  %v1061_v8 = vpop.f32.mrf.mxu1 }
 0x285   : > { %v1012_v19 = vadd.f32 %v1627_v10, %v1011_v7  ;;  %v1094_v21 = vpop.f32.mrf.mxu2 }
 0x286   : > { %v1134_v26 = vpop.f32.mrf.mxu3 }
 0x287   : > { %v1058_v23 = vadd.f32 %v1057_v1, %v1012_v19 }
 0x289   : > { %v1095_v27 = vadd.f32 %v1094_v21, %v1058_v23  ;;  %v1628_v23 = vld [vmem:[%s1851_s6 + $0x3] ss:$0 sm:$0xff] }
 0x28b   : > { %v1135_v32 = vadd.f32 %v1134_v26, %v1095_v27 }
 0x28c   : > { %v1019_v11 = vpop.f32.mrf.mxu0  ;;  %v1065_v12 = vpop.f32.mrf.mxu1 }
 0x28d   : > { %v1020_v28 = vadd.f32 %v1627_v10, %v1019_v11  ;;  %v1099_v35 = vpop.f32.mrf.mxu2 }
 0x28e   : > { %v1140_v43 = vpop.f32.mrf.mxu3 }
 0x28f   : > { %v1062_v33 = vadd.f32 %v1061_v8, %v1020_v28 }
 0x291   : > { %v1100_v40 = vadd.f32 %v1099_v35, %v1062_v33 }
 0x293   : > { %v1141_v47 = vadd.f32 %v1140_v43, %v1100_v40 }
 0x294   : > { %v1027_v17 = vpop.f32.mrf.mxu0  ;;  %v1204_v20 = vpop.f32.mrf.mxu1 }
 0x295   : > { %v1028_v41 = vadd.f32 %v1627_v10, %v1027_v17  ;;  %v1104_v55 = vpop.f32.mrf.mxu2 }
 0x296   : > { %v1146_v61 = vpop.f32.mrf.mxu3 }
 0x297   : > { %v1066_v48 = vadd.f32 %v1065_v12, %v1028_v41 }
 0x299   : > { %v1105_v57 = vadd.f32 %v1104_v55, %v1066_v48 }
 0x29b   : > { %v1147_v63 = vadd.f32 %v1146_v61, %v1105_v57 }
 0x29c   : > { %v1170_v24 = vpop.f32.mrf.mxu0  ;;  %v1208_v31 = vpop.f32.mrf.mxu1 }
 0x29d   : > { %v1171_v25 = vadd.f32 %v1170_v24, %v1129_v22 }
 0x29f   : > { %v1205_v29 = vadd.f32 %v1204_v20, %v1171_v25 }
 0x2a1   : > { %v1219_v30 = vmax.f32 %v1205_v29, 0.0 }
 0x2a3   : > { %v1227_v34 = vsel %vm656_vm1, %v1219_v30, 0 }
 0x2a4   : > { %v1256_v36 = vand.u32 4294901760, %v1227_v34  ;;  %v1174_v37 = vpop.f32.mrf.mxu0  ;;  %v1212_v51 = vpop.f32.mrf.mxu1 }
 0x2a5   : > { %v1175_v38 = vadd.f32 %v1174_v37, %v1135_v32 }
 0x2a6   : > { %v1257_v39 = vsub.f32 %v1227_v34, %v1256_v36  ;;  %1316 = vmatmul.f32.vlgmr.msra.gmra.mxu3 %v1256_v36 }
 0x2a7   : > { %v1209_v42 = vadd.f32 %v1208_v31, %v1175_v38 }
 0x2a8   : > { %1354 = vmatmul.f32.vlgmr.msrb.gmra.mxu0 %v1257_v39  ;;  %v1258_v44 = vand.u32 4294901760, %v1257_v39 }
 0x2a9   : > { %v1220_v45 = vmax.f32 %v1209_v42, 0.0 }
 0x2aa   : > { %1394 = vmatmul.f32.vlgmr.msrb.gmra.mxu1 %v1258_v44  ;;  %v1259_v46 = vsub.f32 %v1257_v39, %v1258_v44 }
 0x2ab   : > { %v1230_v49 = vsel %vm656_vm1, %v1220_v45, 0 }
 0x2ac   : > { %v1264_v50 = vand.u32 4294901760, %v1230_v49  ;;  %v1178_v52 = vpop.f32.mrf.mxu0  ;;  %v1260_v53 = vand.u32 4294901760, %v1259_v46  ;;  %v1216_v5 = vpop.f32.mrf.mxu1 }
 0x2ad   : > { %v1179_v54 = vadd.f32 %v1178_v52, %v1141_v47 }
 0x2ae   : > { %1261 = vmatmul.f32.vlgmr.msra.gmra.mxu2 %v1260_v53  ;;  %1320 = vmatmul.f32.gmra.mxu3 %v1264_v50  ;;  %v1265_v56 = vsub.f32 %v1230_v49, %v1264_v50 }
 0x2af   : > { %v1213_v58 = vadd.f32 %v1212_v51, %v1179_v54 }
 0x2b0   : > { %1359 = vmatmul.f32.gmra.mxu0 %v1265_v56  ;;  %v1266_v59 = vand.u32 4294901760, %v1265_v56 }
 0x2b1   : > { %v1221_v60 = vmax.f32 %v1213_v58, 0.0 }
 0x2b2   : > { %1400 = vmatmul.f32.gmra.mxu1 %v1266_v59  ;;  %v1267_v62 = vsub.f32 %v1265_v56, %v1266_v59 }
 0x2b3   : > { %v1233_v0 = vsel %vm656_vm1, %v1221_v60, 0 }
 0x2b4   : > { %v1272_v1 = vand.u32 4294901760, %v1233_v0  ;;  %v1182_v2 = vpop.f32.mrf.mxu0  ;;  %v1268_v3 = vand.u32 4294901760, %v1267_v62 }
 0x2b5   : > { %v1183_v4 = vadd.f32 %v1182_v2, %v1147_v63 }
 0x2b6   : > { %1269 = vmatmul.f32.gmra.mxu2 %v1268_v3  ;;  %1324 = vmatmul.f32.gmra.mxu3 %v1272_v1  ;;  %v1273_v6 = vsub.f32 %v1233_v0, %v1272_v1 }
 0x2b7   : > { %v1217_v7 = vadd.f32 %v1216_v5, %v1183_v4 }
 0x2b8   : > { %1364 = vmatmul.f32.gmra.mxu0 %v1273_v6  ;;  %v1274_v8 = vand.u32 4294901760, %v1273_v6 }
 0x2b9   : > { %v1222_v9 = vmax.f32 %v1217_v7, 0.0 }
 0x2ba   : > { %1406 = vmatmul.f32.gmra.mxu1 %v1274_v8  ;;  %v1275_v10 = vsub.f32 %v1273_v6, %v1274_v8 }
 0x2bb   : > { %v1236_v11 = vsel %vm656_vm1, %v1222_v9, 0 }
 0x2bc   : > { %v1280_v12 = vand.u32 4294901760, %v1236_v11  ;;  %v1276_v13 = vand.u32 4294901760, %v1275_v10 }
 0x2be   : > { %1277 = vmatmul.f32.gmra.mxu2 %v1276_v13  ;;  %1328 = vmatmul.f32.gmra.mxu3 %v1280_v12  ;;  %v1281_v14 = vsub.f32 %v1236_v11, %v1280_v12 }
 0x2c0   : > { %1369 = vmatmul.f32.gmra.mxu0 %v1281_v14  ;;  %v1282_v15 = vand.u32 4294901760, %v1281_v14 }
 0x2c2   : > { %1412 = vmatmul.f32.gmra.mxu1 %v1282_v15  ;;  %v1283_v16 = vsub.f32 %v1281_v14, %v1282_v15 }
 0x2c4   : > { %v1284_v17 = vand.u32 4294901760, %v1283_v16 }
 0x2c6   : > { %1285 = vmatmul.f32.gmra.mxu2 %v1284_v17  ;;  %1474 = vmatmul.f32.vlgmr.msrb.gmra.mxu3 %v1256_v36 }
 0x2ce   : > { %1439 = vmatmul.f32.vlgmr.msrb.gmra.mxu2 %v1256_v36  ;;  %1478 = vmatmul.f32.gmra.mxu3 %v1264_v50 }
 0x2d6   : > { %1443 = vmatmul.f32.gmra.mxu2 %v1264_v50  ;;  %1482 = vmatmul.f32.gmra.mxu3 %v1272_v1 }
 0x2de   : > { %1447 = vmatmul.f32.gmra.mxu2 %v1272_v1  ;;  %1486 = vmatmul.f32.gmra.mxu3 %v1280_v12 }
 0x2e6   : > { %1451 = vmatmul.f32.gmra.mxu2 %v1280_v12 }
 0x325   : > { %v1355_v27 = vpop.f32.mrf.mxu0 }
 0x327   : > { %v1395_v29 = vpop.f32.mrf.mxu1 }
 0x329   : > { %v1317_v18 = vpop.f32.mrf.mxu3 }
 0x32d   : > { %v1360_v34 = vpop.f32.mrf.mxu0 }
 0x32f   : > { %v1401_v39 = vpop.f32.mrf.mxu1 }
 0x331   : > { %v1262_v19 = vpop.f32.mrf.mxu2  ;;  %v1321_v20 = vpop.f32.mrf.mxu3 }
 0x332   : > { %v1263_v26 = vadd.f32 %v1628_v23, %v1262_v19 }
 0x334   : > { %v1318_v28 = vadd.f32 %v1317_v18, %v1263_v26 }
 0x335   : > { %v1365_v46 = vpop.f32.mrf.mxu0 }
 0x336   : > { %v1356_v32 = vadd.f32 %v1355_v27, %v1318_v28 }
 0x337   : > { %v1407_v52 = vpop.f32.mrf.mxu1 }
 0x338   : > { %v1396_v36 = vadd.f32 %v1395_v29, %v1356_v32 }
 0x339   : > { %v1270_v21 = vpop.f32.mrf.mxu2  ;;  %v1325_v22 = vpop.f32.mrf.mxu3 }
 0x33a   : > { %v1271_v31 = vadd.f32 %v1628_v23, %v1270_v21 }
 0x33c   : > { %v1322_v35 = vadd.f32 %v1321_v20, %v1271_v31 }
 0x33d   : > { %v1370_v58 = vpop.f32.mrf.mxu0 }
 0x33e   : > { %v1361_v42 = vadd.f32 %v1360_v34, %v1322_v35 }
 0x33f   : > { %v1413_v61 = vpop.f32.mrf.mxu1 }
 0x340   : > { %v1402_v45 = vadd.f32 %v1401_v39, %v1361_v42 }
 0x341   : > { %v1278_v24 = vpop.f32.mrf.mxu2  ;;  %v1329_v25 = vpop.f32.mrf.mxu3 }
 0x342   : > { %v1279_v40 = vadd.f32 %v1628_v23, %v1278_v24 }
 0x344   : > { %v1326_v44 = vadd.f32 %v1325_v22, %v1279_v40 }
 0x346   : > { %v1366_v51 = vadd.f32 %v1365_v46, %v1326_v44 }
 0x348   : > { %v1408_v54 = vadd.f32 %v1407_v52, %v1366_v51 }
 0x349   : > { %v1286_v30 = vpop.f32.mrf.mxu2  ;;  %v1475_v33 = vpop.f32.mrf.mxu3 }
 0x34a   : > { %v1287_v49 = vadd.f32 %v1628_v23, %v1286_v30 }
 0x34c   : > { %v1330_v53 = vadd.f32 %v1329_v25, %v1287_v49 }
 0x34e   : > { %v1371_v60 = vadd.f32 %v1370_v58, %v1330_v53 }
 0x350   : > { %v1414_v62 = vadd.f32 %v1413_v61, %v1371_v60 }
 0x351   : > { %v1440_v37 = vpop.f32.mrf.mxu2  ;;  %v1479_v43 = vpop.f32.mrf.mxu3 }
 0x352   : > { %v1441_v38 = vadd.f32 %v1440_v37, %v1396_v36 }
 0x354   : > { %v1476_v41 = vadd.f32 %v1475_v33, %v1441_v38 }
 0x356   : > { %1490 = vst.msk [vmem:[%s1832_s28] sm:$0xff] %vm358_vm0, %v1476_v41 }
 0x359   : > { %v1444_v47 = vpop.f32.mrf.mxu2  ;;  %v1483_v55 = vpop.f32.mrf.mxu3 }
 0x35a   : > { %v1445_v48 = vadd.f32 %v1444_v47, %v1402_v45 }
 0x35c   : > { %v1480_v50 = vadd.f32 %v1479_v43, %v1445_v48 }
 0x35e   : > { %1491 = vst.msk [vmem:[%s1832_s28 + $0x8] sm:$0xff] %vm358_vm0, %v1480_v50 }
 0x361   : > { %v1448_v56 = vpop.f32.mrf.mxu2  ;;  %v1487_v1 = vpop.f32.mrf.mxu3 }
 0x362   : > { %v1449_v57 = vadd.f32 %v1448_v56, %v1408_v54 }
 0x364   : > { %v1484_v59 = vadd.f32 %v1483_v55, %v1449_v57 }
 0x366   : > { %1492 = vst.msk [vmem:[%s1832_s28 + $0x10] sm:$0xff] %vm358_vm0, %v1484_v59 }
 0x369   : > { %v1452_v63 = vpop.f32.mrf.mxu2 }
 0x36a   : > { %v1453_v0 = vadd.f32 %v1452_v63, %v1414_v62 }
 0x36c   : > { %v1488_v2 = vadd.f32 %v1487_v1, %v1453_v0 }
 0x36e   : > { %1493 = vst.msk [vmem:[%s1832_s28 + $0x18] sm:$0xff] %vm358_vm0, %v1488_v2 }
 0x36f PF: > { %s19_s27 = sadd.s32 1, %s1643_s27  }
 0x370   : > { %p16_p4 = scmp.ge.s32.totalorder %s19_s27, 4  }
 0x372   :  { %18 = sbr.rel (!%p16_p4) target bundleno = 1 (0x1), region = 93 }

</bundles_post_ra>
